<compile_context>
chip_gen: v7x
topology: tpu7x:2x2x1
jax: 0.10.0
libtpu: 0.0.40
codegen_flags: <defaults>
</compile_context>

<pallas_src>
from functools import partial

import jax
import jax.numpy as jnp
from jax import lax
from jax.experimental import pallas as pl
from jax.experimental.pallas import tpu as pltpu


# ---------------------------------------------------------------------------
# kernel factory: (Beta, H_prior, W_prior) is static config, exactly mirroring
# the update-function selection done in NMF_algorithim.__init__
# ---------------------------------------------------------------------------
def _make_kernel(Beta, H_prior, W_prior, M, K, N):
    def kernel(W_ref, H_ref, Vm_ref, mask_ref, lamc_ref, lamr_ref,
               scal_ref, niter_ref, h_out, w_out, lam_out):
        phi = scal_ref[0]
        eps_ = scal_ref[1]
        b0 = scal_ref[2]
        C = scal_ref[3]
        n_iter = niter_ref[0]

        Vm = Vm_ref[...]        # (M, N)  == V * mask  (precomputed, loaded once)
        mask = mask_ref[...]    # (M, N)

        # ones vectors used for row/column reductions (hoisted out of the loop)
        ones_row_m = jnp.ones((1, M), jnp.float32)
        ones_col_m = jnp.ones((M, 1), jnp.float32)
        ones_row_n = jnp.ones((1, N), jnp.float32)
        ones_col_n = jnp.ones((N, 1), jnp.float32)

        def body(_, carry):
            W, H, lam_col, lam_row = carry

            # ------------------ H update ------------------
            V_ap = jnp.dot(W, H, preferred_element_type=jnp.float32) + eps_
            if Beta == 2:   # gaussian
                lhs_cat = jnp.concatenate([Vm, V_ap * mask], axis=1)      # (M, 2N)
            else:           # poisson
                V_res = Vm * pl.reciprocal(V_ap, approx=False)
                lhs_cat = jnp.concatenate([V_res, mask], axis=1)          # (M, 2N)
            # fused W^T @ [num_src | denom_src]  (no transpose materialized)
            prod_h = lax.dot_general(W, lhs_cat, (((0,), (0,)), ((), ())),
                                     preferred_element_type=jnp.float32)  # (K, 2N)
            num_h = prod_h[:, :N]
            den_h = prod_h[:, N:]
            if H_prior == 'L1':
                denom_h = den_h + phi / lam_col + eps_
            else:  # L2
                denom_h = den_h + phi * H / lam_col + eps_
            ratio_h = num_h / denom_h
            if Beta == 1 and H_prior == 'L2':
                ratio_h = jnp.sqrt(ratio_h)
            h_new = H * ratio_h

            # ------------------ W update (uses updated H) ------------------
            V_ap2 = jnp.dot(W, h_new, preferred_element_type=jnp.float32) + eps_
            if Beta == 2:   # gaussian
                rhs_cat = jnp.concatenate([Vm, V_ap2 * mask], axis=0)     # (2M, N)
            else:           # poisson
                V_res2 = Vm * pl.reciprocal(V_ap2, approx=False)
                rhs_cat = jnp.concatenate([V_res2, mask], axis=0)         # (2M, N)
            # fused [num_src ; denom_src] @ h_new^T  (no transpose materialized)
            prod_w = lax.dot_general(rhs_cat, h_new, (((1,), (1,)), ((), ())),
                                     preferred_element_type=jnp.float32)  # (2M, K)
            num_w = prod_w[:M, :]
            den_w = prod_w[M:, :]
            if W_prior == 'L1':
                denom_w = den_w + phi / lam_row + eps_
            else:  # L2
                denom_w = den_w + phi * W / lam_row + eps_
            ratio_w = num_w / denom_w
            if Beta == 1 and W_prior == 'L2':
                ratio_w = jnp.sqrt(ratio_w)
            w_new = W * ratio_w

            # ------------------ lambda update ------------------
            # selection only depends on the priors (same mapping as the module)
            Wr = w_new if W_prior == 'L1' else w_new * w_new
            Hr = h_new if H_prior == 'L1' else h_new * h_new
            w_scale = 1.0 if W_prior == 'L1' else 0.5
            h_scale = 1.0 if H_prior == 'L1' else 0.5
            # row form (1, K): used by the W update of the next iteration / output
            w_row = jnp.dot(ones_row_m, Wr,
                            preferred_element_type=jnp.float32) * w_scale
            h_row = lax.dot_general(ones_row_n, Hr, (((1,), (1,)), ((), ())),
                                    preferred_element_type=jnp.float32) * h_scale
            lam_row_new = (w_row + h_row + b0) / C
            # column form (K, 1): used by the H update of the next iteration
            w_col = lax.dot_general(Wr, ones_col_m, (((0,), (0,)), ((), ())),
                                    preferred_element_type=jnp.float32) * w_scale
            h_col = jnp.dot(Hr, ones_col_n,
                            preferred_element_type=jnp.float32) * h_scale
            lam_col_new = (w_col + h_col + b0) / C

            return (w_new, h_new, lam_col_new, lam_row_new)

        W0 = W_ref[...]
        H0 = H_ref[...]
        Wf, Hf, _, lam_row_f = lax.fori_loop(
            0, n_iter, body, (W0, H0, lamc_ref[...], lamr_ref[...]))

        h_out[...] = Hf
        w_out[...] = Wf
        lam_out[...] = lam_row_f

    return kernel


# ---------------------------------------------------------------------------
# wrapper (glue: Vm precompute, scalar packing, pallas_call)
# ---------------------------------------------------------------------------
@partial(jax.jit, static_argnames=('Beta', 'H_prior', 'W_prior'))
def nmf_forward(W, H, V, lambda_, C, b0, eps_, phi, mask, n_iter=1, *,
                Beta=2, H_prior='L1', W_prior='L1'):
    M, K = W.shape
    K2, N = H.shape
    assert K2 == K and V.shape == (M, N) and mask.shape == (M, N)

    W = W.astype(jnp.float32)
    H = H.astype(jnp.float32)
    mask = mask.astype(jnp.float32)
    Vm = V.astype(jnp.float32) * mask          # constant across iterations; V never enters the kernel

    lam_col = lambda_.reshape(K, 1).astype(jnp.float32)
    lam_row = lambda_.reshape(1, K).astype(jnp.float32)
    scal = jnp.stack([jnp.asarray(phi, jnp.float32),
                      jnp.asarray(eps_, jnp.float32),
                      jnp.asarray(b0, jnp.float32),
                      jnp.asarray(C, jnp.float32)])
    niter = jnp.reshape(jnp.asarray(n_iter, jnp.int32), (1,))

    kernel = _make_kernel(Beta, H_prior, W_prior, M, K, N)

    vmem = pl.BlockSpec(memory_space=pltpu.MemorySpace.VMEM)
    smem = pl.BlockSpec(memory_space=pltpu.MemorySpace.SMEM)

    # rough single-block VMEM budget (inputs + outputs + loop temporaries), clamped
    # so it stays within the physical VMEM of every generation (v7x: 64 MiB).
    est_bytes = 4 * (12 * M * N + 8 * (M * K + K * N) + 8 * K) + (1 << 20)
    vmem_limit = int(min(max(est_bytes, 16 * 2**20), 48 * 2**20))

    h_, w_, lam2d = pl.pallas_call(
        kernel,
        out_shape=(jax.ShapeDtypeStruct((K, N), jnp.float32),
                   jax.ShapeDtypeStruct((M, K), jnp.float32),
                   jax.ShapeDtypeStruct((1, K), jnp.float32)),
        in_specs=[vmem, vmem, vmem, vmem, vmem, vmem, smem, smem],
        out_specs=(vmem, vmem, vmem),
        compiler_params=pltpu.CompilerParams(vmem_limit_bytes=vmem_limit),
    )(W, H, Vm, mask, lam_col, lam_row, scal, niter)

    return h_, w_, lam2d.reshape(K)


# ---------------------------------------------------------------------------
# pure-JAX reference (mirrors the torch update functions exactly)
# ---------------------------------------------------------------------------
def nmf_forward_ref(W, H, V, lambda_, C, b0, eps_, phi, mask,
                    *, Beta, H_prior, W_prior):
    Vm = V * mask
    lam_col = lambda_.reshape(-1, 1)

    # H update
    V_ap = W @ H + eps_
    if Beta == 2:
        if H_prior == 'L1':
            denom = W.T @ (V_ap * mask) + phi / lam_col + eps_
        else:
            denom = W.T @ (V_ap * mask) + phi * H / lam_col + eps_
        h = H * ((W.T @ Vm) / denom)
    else:
        V_res = Vm / V_ap
        if H_prior == 'L1':
            denom = W.T @ mask + phi / lam_col + eps_
            h = H * ((W.T @ V_res) / denom)
        else:
            denom = W.T @ mask + phi * H / lam_col + eps_
            h = H * jnp.sqrt((W.T @ V_res) / denom)

    # W update (with updated H)
    V_ap = W @ h + eps_
    if Beta == 2:
        if W_prior == 'L1':
            denom = (V_ap * mask) @ h.T + phi / lambda_ + eps_
        else:
            denom = (V_ap * mask) @ h.T + phi * W / lambda_ + eps_
        w = W * ((Vm @ h.T) / denom)
    else:
        V_res = Vm / V_ap
        if W_prior == 'L1':
            denom = mask @ h.T + phi / lambda_ + eps_
            w = W * ((V_res @ h.T) / denom)
        else:
            denom = mask @ h.T + phi * W / lambda_ + eps_
            w = W * jnp.sqrt((V_res @ h.T) / denom)

    w_part = jnp.sum(w, 0) if W_prior == 'L1' else 0.5 * jnp.sum(w * w, 0)
    h_part = jnp.sum(h, 1) if H_prior == 'L1' else 0.5 * jnp.sum(h * h, 1)
    lam = (w_part + h_part + b0) / C
    return h, w, lam


def nmf_forward_ref_multi(W, H, V, lambda_, C, b0, eps_, phi, mask,
                          *, Beta, H_prior, W_prior, n_iter):
    for _ in range(n_iter):
        H, W, lambda_ = nmf_forward_ref(W, H, V, lambda_, C, b0, eps_, phi, mask,
                                        Beta=Beta, H_prior=H_prior, W_prior=W_prior)
    return H, W, lambda_


# ---------------------------------------------------------------------------
if __name__ == "__main__":
    key = jax.random.PRNGKey(0)
    M, K, N = 64, 8, 128  # V: (M, N), W: (M, K), H: (K, N), lambda_: (K,)

    kV, kW, kH, kL, kM = jax.random.split(key, 5)
    V = jax.random.uniform(kV, (M, N), jnp.float32, minval=0.1, maxval=2.0)
    W = jax.random.uniform(kW, (M, K), jnp.float32, minval=0.1, maxval=1.0)
    H = jax.random.uniform(kH, (K, N), jnp.float32, minval=0.1, maxval=1.0)
    lambda_ = jax.random.uniform(kL, (K,), jnp.float32, minval=0.5, maxval=2.0)
    mask = (jax.random.uniform(kM, (M, N)) > 0.1).astype(jnp.float32)

    phi = 1.0
    eps_ = 1e-7
    b0 = 1.0
    C = float(0.5 * (M + N) + b0 + 1.0)

    ok = True
    for Beta in (1, 2):
        for H_prior in ('L1', 'L2'):
            for W_prior in ('L1', 'L2'):
                # one fused iteration == torch module forward()
                h_k, w_k, lam_k = nmf_forward(
                    W, H, V, lambda_, C, b0, eps_, phi, mask,
                    Beta=Beta, H_prior=H_prior, W_prior=W_prior)
                jax.block_until_ready((h_k, w_k, lam_k))
                h_r, w_r, lam_r = nmf_forward_ref(
                    W, H, V, lambda_, C, b0, eps_, phi, mask,
                    Beta=Beta, H_prior=H_prior, W_prior=W_prior)
                for a, b in ((h_k, h_r), (w_k, w_r), (lam_k, lam_r)):
                    if not jnp.allclose(a, b, rtol=1e-5, atol=1e-5):
                        ok = False

                # fused multi-iteration path (same compiled executable; n_iter is dynamic)
                n_it = 4
                h_k, w_k, lam_k = nmf_forward(
                    W, H, V, lambda_, C, b0, eps_, phi, mask, n_it,
                    Beta=Beta, H_prior=H_prior, W_prior=W_prior)
                jax.block_until_ready((h_k, w_k, lam_k))
                h_r, w_r, lam_r = nmf_forward_ref_multi(
                    W, H, V, lambda_, C, b0, eps_, phi, mask,
                    Beta=Beta, H_prior=H_prior, W_prior=W_prior, n_iter=n_it)
                for a, b in ((h_k, h_r), (w_k, w_r), (lam_k, lam_r)):
                    if not jnp.allclose(a, b, rtol=1e-4, atol=1e-4):
                        ok = False

    if ok:
        print("KERNEL_OK")
    else:
        print("KERNEL_MISMATCH")
</pallas_src>

<mosaic_0001>
module attributes {stable_mosaic.version = 11 : i64} {
  func.func @kernel(%arg0: memref<64x8xf32, #tpu.memory_space<vmem>>, %arg1: memref<8x128xf32, #tpu.memory_space<vmem>>, %arg2: memref<64x128xf32, #tpu.memory_space<vmem>>, %arg3: memref<64x128xf32, #tpu.memory_space<vmem>>, %arg4: memref<8x1xf32, #tpu.memory_space<vmem>>, %arg5: memref<1x8xf32, #tpu.memory_space<vmem>>, %arg6: memref<4xf32, #tpu.memory_space<smem>>, %arg7: memref<1xi32, #tpu.memory_space<smem>>, %arg8: memref<8x128xf32, #tpu.memory_space<vmem>>, %arg9: memref<64x8xf32, #tpu.memory_space<vmem>>, %arg10: memref<1x8xf32, #tpu.memory_space<vmem>>) attributes {dimension_semantics = [], scalar_prefetch = 0 : i64, scratch_operands = 0 : i64, tpu.core_type = #tpu.core_type<tc>} {
    %c0 = arith.constant 0 : index
    %0 = memref.load %arg6[%c0] : memref<4xf32, #tpu.memory_space<smem>>
    %c1 = arith.constant 1 : index
    %1 = memref.load %arg6[%c1] : memref<4xf32, #tpu.memory_space<smem>>
    %c2 = arith.constant 2 : index
    %2 = memref.load %arg6[%c2] : memref<4xf32, #tpu.memory_space<smem>>
    %c3 = arith.constant 3 : index
    %3 = memref.load %arg6[%c3] : memref<4xf32, #tpu.memory_space<smem>>
    %c0_0 = arith.constant 0 : index
    %4 = memref.load %arg7[%c0_0] : memref<1xi32, #tpu.memory_space<smem>>
    %c0_1 = arith.constant 0 : index
    %c0_2 = arith.constant 0 : index
    %5 = vector.load %arg2[%c0_1, %c0_2] : memref<64x128xf32, #tpu.memory_space<vmem>>, vector<64x128xf32>
    %c0_3 = arith.constant 0 : index
    %c0_4 = arith.constant 0 : index
    %6 = vector.load %arg3[%c0_3, %c0_4] : memref<64x128xf32, #tpu.memory_space<vmem>>, vector<64x128xf32>
    %cst = arith.constant 1.000000e+00 : f32
    %7 = vector.broadcast %cst : f32 to vector<1x64xf32>
    %cst_5 = arith.constant 1.000000e+00 : f32
    %8 = vector.broadcast %cst_5 : f32 to vector<64x1xf32>
    %cst_6 = arith.constant 1.000000e+00 : f32
    %9 = vector.broadcast %cst_6 : f32 to vector<1x128xf32>
    %cst_7 = arith.constant 1.000000e+00 : f32
    %10 = vector.broadcast %cst_7 : f32 to vector<128x1xf32>
    %c0_8 = arith.constant 0 : index
    %c0_9 = arith.constant 0 : index
    %11 = vector.load %arg0[%c0_8, %c0_9] : memref<64x8xf32, #tpu.memory_space<vmem>>, vector<64x8xf32>
    %c0_10 = arith.constant 0 : index
    %c0_11 = arith.constant 0 : index
    %12 = vector.load %arg1[%c0_10, %c0_11] : memref<8x128xf32, #tpu.memory_space<vmem>>, vector<8x128xf32>
    %c0_12 = arith.constant 0 : index
    %c0_13 = arith.constant 0 : index
    %13 = vector.load %arg4[%c0_12, %c0_13] : memref<8x1xf32, #tpu.memory_space<vmem>>, vector<8x1xf32>
    %c0_14 = arith.constant 0 : index
    %c0_15 = arith.constant 0 : index
    %14 = vector.load %arg5[%c0_14, %c0_15] : memref<1x8xf32, #tpu.memory_space<vmem>>, vector<1x8xf32>
    %c0_i32 = arith.constant 0 : i32
    %15 = arith.subi %4, %c0_i32 : i32
    %16 = arith.addi %c0_i32, %15 : i32
    %c1_i32 = arith.constant 1 : i32
    %17:4 = scf.for %arg11 = %c0_i32 to %16 step %c1_i32 iter_args(%arg12 = %11, %arg13 = %12, %arg14 = %13, %arg15 = %14) -> (vector<64x8xf32>, vector<8x128xf32>, vector<8x1xf32>, vector<1x8xf32>)  : i32 {
      %cst_22 = arith.constant dense<0.000000e+00> : vector<64x128xf32>
      %21 = tpu.matmul %arg12, %arg13, %cst_22 {dimension_numbers = #tpu.dot_dimension_numbers<[1], [0], [0], [1], [0, 0, 1, 1], [], []>} : vector<64x8xf32>, vector<8x128xf32>, vector<64x128xf32> -> vector<64x128xf32>
      %22 = vector.broadcast %1 : f32 to vector<64x128xf32>
      %23 = arith.addf %21, %22 : vector<64x128xf32>
      %24 = tpu.reciprocal %23 : vector<64x128xf32> -> vector<64x128xf32>
      %25 = arith.mulf %5, %24 : vector<64x128xf32>
      %26 = tpu.concatenate %25, %6 in 1 : vector<64x128xf32>, vector<64x128xf32> -> vector<64x256xf32>
      %cst_23 = arith.constant dense<0.000000e+00> : vector<8x256xf32>
      %27 = tpu.matmul %arg12, %26, %cst_23 {dimension_numbers = #tpu.dot_dimension_numbers<[0], [0], [1], [1], [0, 1, 1, 1], [], []>} : vector<64x8xf32>, vector<64x256xf32>, vector<8x256xf32> -> vector<8x256xf32>
      %28 = vector.extract_strided_slice %27 {offsets = [0, 0], sizes = [8, 128], strides = [1, 1]} : vector<8x256xf32> to vector<8x128xf32>
      %29 = vector.extract_strided_slice %27 {offsets = [0, 128], sizes = [8, 128], strides = [1, 1]} : vector<8x256xf32> to vector<8x128xf32>
      %30 = vector.broadcast %0 : f32 to vector<8x1xf32>
      %31 = arith.divf %30, %arg14 : vector<8x1xf32>
      %32 = vector.broadcast %31 : vector<8x1xf32> to vector<8x128xf32>
      %33 = arith.addf %29, %32 : vector<8x128xf32>
      %34 = vector.broadcast %1 : f32 to vector<8x128xf32>
      %35 = arith.addf %33, %34 : vector<8x128xf32>
      %36 = arith.divf %28, %35 : vector<8x128xf32>
      %37 = arith.mulf %arg13, %36 : vector<8x128xf32>
      %cst_24 = arith.constant dense<0.000000e+00> : vector<64x128xf32>
      %38 = tpu.matmul %arg12, %37, %cst_24 {dimension_numbers = #tpu.dot_dimension_numbers<[1], [0], [0], [1], [0, 0, 1, 1], [], []>} : vector<64x8xf32>, vector<8x128xf32>, vector<64x128xf32> -> vector<64x128xf32>
      %39 = vector.broadcast %1 : f32 to vector<64x128xf32>
      %40 = arith.addf %38, %39 : vector<64x128xf32>
      %41 = tpu.reciprocal %40 : vector<64x128xf32> -> vector<64x128xf32>
      %42 = arith.mulf %5, %41 : vector<64x128xf32>
      %43 = tpu.concatenate %42, %6 in 0 : vector<64x128xf32>, vector<64x128xf32> -> vector<128x128xf32>
      %cst_25 = arith.constant dense<0.000000e+00> : vector<128x8xf32>
      %44 = tpu.matmul %43, %37, %cst_25 {dimension_numbers = #tpu.dot_dimension_numbers<[1], [1], [0], [0], [0, 0, 1, 0], [], []>} : vector<128x128xf32>, vector<8x128xf32>, vector<128x8xf32> -> vector<128x8xf32>
      %45 = vector.extract_strided_slice %44 {offsets = [0, 0], sizes = [64, 8], strides = [1, 1]} : vector<128x8xf32> to vector<64x8xf32>
      %46 = vector.extract_strided_slice %44 {offsets = [64, 0], sizes = [64, 8], strides = [1, 1]} : vector<128x8xf32> to vector<64x8xf32>
      %47 = vector.broadcast %0 : f32 to vector<1x8xf32>
      %48 = arith.divf %47, %arg15 : vector<1x8xf32>
      %49 = vector.broadcast %48 : vector<1x8xf32> to vector<64x8xf32>
      %50 = arith.addf %46, %49 : vector<64x8xf32>
      %51 = vector.broadcast %1 : f32 to vector<64x8xf32>
      %52 = arith.addf %50, %51 : vector<64x8xf32>
      %53 = arith.divf %45, %52 : vector<64x8xf32>
      %54 = arith.mulf %arg12, %53 : vector<64x8xf32>
      %cst_26 = arith.constant dense<0.000000e+00> : vector<1x8xf32>
      %55 = tpu.matmul %7, %54, %cst_26 {dimension_numbers = #tpu.dot_dimension_numbers<[1], [0], [0], [1], [0, 0, 1, 1], [], []>} : vector<1x64xf32>, vector<64x8xf32>, vector<1x8xf32> -> vector<1x8xf32>
      %cst_27 = arith.constant 1.000000e+00 : f32
      %56 = vector.broadcast %cst_27 : f32 to vector<1x8xf32>
      %57 = arith.mulf %55, %56 : vector<1x8xf32>
      %cst_28 = arith.constant dense<0.000000e+00> : vector<1x8xf32>
      %58 = tpu.matmul %9, %37, %cst_28 {dimension_numbers = #tpu.dot_dimension_numbers<[1], [1], [0], [0], [0, 0, 1, 0], [], []>} : vector<1x128xf32>, vector<8x128xf32>, vector<1x8xf32> -> vector<1x8xf32>
      %cst_29 = arith.constant 1.000000e+00 : f32
      %59 = vector.broadcast %cst_29 : f32 to vector<1x8xf32>
      %60 = arith.mulf %58, %59 : vector<1x8xf32>
      %61 = arith.addf %57, %60 : vector<1x8xf32>
      %62 = vector.broadcast %2 : f32 to vector<1x8xf32>
      %63 = arith.addf %61, %62 : vector<1x8xf32>
      %64 = vector.broadcast %3 : f32 to vector<1x8xf32>
      %65 = arith.divf %63, %64 : vector<1x8xf32>
      %cst_30 = arith.constant dense<0.000000e+00> : vector<8x1xf32>
      %66 = tpu.matmul %54, %8, %cst_30 {dimension_numbers = #tpu.dot_dimension_numbers<[0], [0], [1], [1], [0, 1, 1, 1], [], []>} : vector<64x8xf32>, vector<64x1xf32>, vector<8x1xf32> -> vector<8x1xf32>
      %cst_31 = arith.constant 1.000000e+00 : f32
      %67 = vector.broadcast %cst_31 : f32 to vector<8x1xf32>
      %68 = arith.mulf %66, %67 : vector<8x1xf32>
      %cst_32 = arith.constant dense<0.000000e+00> : vector<8x1xf32>
      %69 = tpu.matmul %37, %10, %cst_32 {dimension_numbers = #tpu.dot_dimension_numbers<[1], [0], [0], [1], [0, 0, 1, 1], [], []>} : vector<8x128xf32>, vector<128x1xf32>, vector<8x1xf32> -> vector<8x1xf32>
      %cst_33 = arith.constant 1.000000e+00 : f32
      %70 = vector.broadcast %cst_33 : f32 to vector<8x1xf32>
      %71 = arith.mulf %69, %70 : vector<8x1xf32>
      %72 = arith.addf %68, %71 : vector<8x1xf32>
      %73 = vector.broadcast %2 : f32 to vector<8x1xf32>
      %74 = arith.addf %72, %73 : vector<8x1xf32>
      %75 = vector.broadcast %3 : f32 to vector<8x1xf32>
      %76 = arith.divf %74, %75 : vector<8x1xf32>
      scf.yield %54, %37, %76, %65 : vector<64x8xf32>, vector<8x128xf32>, vector<8x1xf32>, vector<1x8xf32>
    }
    %c0_16 = arith.constant 0 : index
    %c0_17 = arith.constant 0 : index
    %18 = vector.load %arg8[%c0_16, %c0_17] : memref<8x128xf32, #tpu.memory_space<vmem>>, vector<8x128xf32>
    tpu.vector_store %arg8[%c0_16, %c0_17], %17#1 {strides = array<i32>} : memref<8x128xf32, #tpu.memory_space<vmem>>, vector<8x128xf32>,
    %c0_18 = arith.constant 0 : index
    %c0_19 = arith.constant 0 : index
    %19 = vector.load %arg9[%c0_18, %c0_19] : memref<64x8xf32, #tpu.memory_space<vmem>>, vector<64x8xf32>
    tpu.vector_store %arg9[%c0_18, %c0_19], %17#0 {strides = array<i32>} : memref<64x8xf32, #tpu.memory_space<vmem>>, vector<64x8xf32>,
    %c0_20 = arith.constant 0 : index
    %c0_21 = arith.constant 0 : index
    %20 = vector.load %arg10[%c0_20, %c0_21] : memref<1x8xf32, #tpu.memory_space<vmem>>, vector<1x8xf32>
    tpu.vector_store %arg10[%c0_20, %c0_21], %17#3 {strides = array<i32>} : memref<1x8xf32, #tpu.memory_space<vmem>>, vector<1x8xf32>,
    return
  }
}

</mosaic_0001>

<bundles_post_ra>
// kernel: mul.1
= control target key start
LH: loop header
LB: loop body
LE: loop exit
PB: predicated region body
PF: predicated region fallthrough
CT: control target
= control target key end

     0   :  { %s188_s0 = inlined_call_operand.vmem [shape: f32[64,128], index: 0, kind: input, shape index: {}]   ;;  %s189_s1 = inlined_call_operand.vmem [shape: f32[64,128], index: 1, kind: input, shape index: {}]   ;;  %s190_s2 = inlined_call_operand.vmem [shape: f32[64,128], index: 2, kind: output, shape index: {}]  }
   0x1   :  { %v3_v0 = vld [vmem:[%s188_s0] sm:$0xff]  ;;  %v80_v2 = vld [vmem:[%s188_s0 + $0x8] sm:$0xff]  ;;  %v83_v5 = vld [vmem:[%s188_s0 + $0x10] sm:$0xff] }
   0x2   :  { %v4_v1 = vld [vmem:[%s189_s1] sm:$0xff]  ;;  %v81_v4 = vld [vmem:[%s189_s1 + $0x8] sm:$0xff]  ;;  %v84_v6 = vld [vmem:[%s189_s1 + $0x10] sm:$0xff] }
   0x3   :  { %v7_v3 = vmul.f32 %v4_v1, %v3_v0  ;;  %v16_v7 = vmul.f32 %v81_v4, %v80_v2  ;;  %v26_v8 = vmul.f32 %v84_v6, %v83_v5  ;;  %v86_v9 = vld [vmem:[%s188_s0 + $0x18] sm:$0xff]  ;;  %v89_v11 = vld [vmem:[%s188_s0 + $0x20] sm:$0xff]  ;;  %v92_v14 = vld [vmem:[%s188_s0 + $0x28] sm:$0xff] }
   0x4   :  { %v87_v10 = vld [vmem:[%s189_s1 + $0x18] sm:$0xff]  ;;  %v90_v13 = vld [vmem:[%s189_s1 + $0x20] sm:$0xff]  ;;  %v93_v15 = vld [vmem:[%s189_s1 + $0x28] sm:$0xff] }
   0x5   :  { %9 = vst [vmem:[%s190_s2] sm:$0xff] %v7_v3  ;;  %v36_v12 = vmul.f32 %v87_v10, %v86_v9  ;;  %82 = vst [vmem:[%s190_s2 + $0x8] sm:$0xff] %v16_v7  ;;  %v46_v16 = vmul.f32 %v90_v13, %v89_v11  ;;  %v56_v17 = vmul.f32 %v93_v15, %v92_v14  ;;  %v95_v18 = vld [vmem:[%s188_s0 + $0x30] sm:$0xff]  ;;  %v98_v20 = vld [vmem:[%s188_s0 + $0x38] sm:$0xff] }
   0x6   :  { %85 = vst [vmem:[%s190_s2 + $0x10] sm:$0xff] %v26_v8  ;;  %v96_v19 = vld [vmem:[%s189_s1 + $0x30] sm:$0xff]  ;;  %v99_v22 = vld [vmem:[%s189_s1 + $0x38] sm:$0xff] }
   0x7   :  { %88 = vst [vmem:[%s190_s2 + $0x18] sm:$0xff] %v36_v12  ;;  %v66_v21 = vmul.f32 %v96_v19, %v95_v18  ;;  %91 = vst [vmem:[%s190_s2 + $0x20] sm:$0xff] %v46_v16  ;;  %v76_v23 = vmul.f32 %v99_v22, %v98_v20 }
   0x8   :  { %94 = vst [vmem:[%s190_s2 + $0x28] sm:$0xff] %v56_v17 }
   0x9   :  { %97 = vst [vmem:[%s190_s2 + $0x30] sm:$0xff] %v66_v21  ;;  %100 = vst [vmem:[%s190_s2 + $0x38] sm:$0xff] %v76_v23 }

// kernel: nmf_forward.1
= control target key start
LH: loop header
LB: loop body
LE: loop exit
PB: predicated region body
PF: predicated region fallthrough
CT: control target
= control target key end

     0   :  { %17 = vsyncpa [#allocation5], 0  ;;  %s2436_s0 = inlined_call_operand.vmem [shape: f32[64,8], index: 0, kind: input, shape index: {}]   ;;  %s2437_s1 = inlined_call_operand.vmem [shape: f32[8,128], index: 1, kind: input, shape index: {}]   ;;  %s2438_s2 = inlined_call_operand.vmem [shape: f32[64,128], index: 2, kind: input, shape index: {}]   ;;  %s2439_s3 = inlined_call_operand.vmem [shape: f32[64,128], index: 3, kind: input, shape index: {}]   ;;  %s2440_s4 = inlined_call_operand.vmem [shape: f32[8,1], index: 4, kind: input, shape index: {}]   ;;  %s2441_s5 = inlined_call_operand.vmem [shape: f32[1,8], index: 5, kind: input, shape index: {}]   ;;  %s2442_s6 = inlined_call_operand.vmem [shape: f32[4], index: 6, kind: input, shape index: {}]   ;;  %s2443_s7 = inlined_call_operand.<no memory space> [shape: s32[1], index: 7, kind: input, shape index: {}]   ;;  %s2444_s8 = inlined_call_operand.hbm [shape: f32[8,128], index: 8, kind: output, shape index: {0}]   ;;  %s2445_s9 = inlined_call_operand.vmem [shape: f32[64,8], index: 9, kind: output, shape index: {1}]   ;;  %s2446_s10 = inlined_call_operand.hbm [shape: f32[1,8], index: 10, kind: output, shape index: {2}]  }
   0x1   :  { %18 = vsyncpa [#allocation4], 0 }
   0x2   :  { %19 = vsyncpa [#allocation8], 0  ;;  %s38_s15 = sshll.u32 %s2442_s6, 4  ;;  %s39_s15 = int_to_ptr.vmem [resolvable:$true] %s38_s15 }
   0x3   :  { %s1606_s16 = scalar_lea.vmem %s39_s15, 16  ;;  %p1611_p1 = scmp.lt.s32.totalorder %s39_s15, %s39_s15 }
   0x4   :  { %p1607_p0 = scmp.ne.s32.totalorder %s39_s15, %s1606_s16  ;;  %p1612_p2 = scmp.lt.s32.totalorder %s1606_s16, %s1606_s16 }
   0x6   :  { %p1613_p3 = por %p1612_p2, %p1611_p1 }
   0x8   :  { %p1614_p4 = pnand %p1613_p3, %p1607_p0 }
   0xa   :  { %1617 = shalt.err (!%p1614_p4)
}
   0xb   :  { %s1844_s17 = smov [#allocation3]  }
   0xc   :  { %41 = dma.vmem_to_smem %s39_s15, 16, %s1844_s17, [#allocation5]  }
   0xd   :  { %1750 = dma.done.wait [#allocation5], 16  }
   0xe   :  { %1751 = vsyncadd [#allocation5], 4294967280 }
   0xf   :  { %47 = sfence }
  0x10   :  { %s1911_s18 = sld [smem:[#allocation3]]  ;;  %s1913_s19 = sld [smem:[#allocation3 + $0x1]]  ;;  %v1918_v0 = vld [vmem:[%s2438_s2] sm:$0xff]  ;;  %v1923_v1 = vld [vmem:[%s2438_s2 + $0x8] sm:$0xff]  ;;  %v1932_v2 = vld [vmem:[%s2438_s2 + $0x10] sm:$0xff] }
  0x11   :  { %s1925_s23 = sld [smem:[#allocation3 + $0x2]]  ;;  %s1927_s24 = sld [smem:[#allocation3 + $0x3]]  ;;  %v1937_v3 = vld [vmem:[%s2438_s2 + $0x18] sm:$0xff]  ;;  %v1942_v4 = vld [vmem:[%s2438_s2 + $0x20] sm:$0xff]  ;;  %v1947_v5 = vld [vmem:[%s2438_s2 + $0x28] sm:$0xff] }
  0x12   :  { %v1952_v6 = vld [vmem:[%s2438_s2 + $0x30] sm:$0xff]  ;;  %v1957_v7 = vld [vmem:[%s2438_s2 + $0x38] sm:$0xff]  ;;  %v1962_v8 = vld [vmem:[%s2439_s3] sm:$0xff]  ;;  %p1087_p5 = scmp.le.s32.totalorder %s2443_s7, 0 }
  0x13   :  { %v1967_v9 = vld [vmem:[%s2439_s3 + $0x8] sm:$0xff]  ;;  %v1972_v10 = vld [vmem:[%s2439_s3 + $0x10] sm:$0xff]  ;;  %v1977_v11 = vld [vmem:[%s2439_s3 + $0x18] sm:$0xff] }
  0x14   :  { %v1982_v12 = vld [vmem:[%s2439_s3 + $0x20] sm:$0xff]  ;;  %v1987_v13 = vld [vmem:[%s2439_s3 + $0x28] sm:$0xff]  ;;  %v1992_v14 = vld [vmem:[%s2439_s3 + $0x30] sm:$0xff] }
  0x15   :  { %v1997_v15 = vld [vmem:[%s2439_s3 + $0x38] sm:$0xff]  ;;  %v69_v16 = vld [vmem:[%s2436_s0] sm:$0xff]   ;;  %v70_v17 = vld [vmem:[%s2436_s0 + $0x8] sm:$0xff]   ;;  %1059 = sbr.rel (%p1087_p5) target bundleno = 1334 (0x536), region = 73 }
  0x16   :  { %v71_v18 = vld [vmem:[%s2436_s0 + $0x10] sm:$0xff]   ;;  %v72_v19 = vld [vmem:[%s2436_s0 + $0x18] sm:$0xff]   ;;  %v73_v20 = vld [vmem:[%s2436_s0 + $0x20] sm:$0xff]   ;;  %v2455_v35 = vmov %v70_v17  ;;  %v2456_v36 = vmov %v69_v16 }
  0x17   :  { %v74_v21 = vld [vmem:[%s2436_s0 + $0x28] sm:$0xff]   ;;  %v75_v22 = vld [vmem:[%s2436_s0 + $0x30] sm:$0xff]   ;;  %v76_v23 = vld [vmem:[%s2436_s0 + $0x38] sm:$0xff]   ;;  %v2452_v32 = vmov %v73_v20  ;;  %v2453_v33 = vmov %v72_v19  ;;  %v2454_v34 = vmov %v71_v18  ;;  %s2077_s0 = smov (!%p1087_p5), 0  }
  0x18   :  { %v77_v24 = vld [vmem:[%s2437_s1] sm:$0xff]   ;;  %v2449_v29 = vmov %v76_v23  ;;  %v2450_v30 = vmov %v75_v22  ;;  %v2451_v31 = vmov %v74_v21 }
  0x19   :  { %v78_v25 = vld [vmem:[%s2440_s4] sm:$0xff]   ;;  %v2448_v28 = vmov %v77_v24 }
  0x1a   :  { %v79_v26 = vld [vmem:[%s2441_s5] sm:$0x1]  }
  0x1b   :  { %v2447_v27 = vmov %v79_v26 }
  0x1c LB: > { %vm98_vm0 = vcmask 64512   ;;  %1179 = vmatprep.subr.mxu1 %v1766_v24  ;;  %244 = vxpose.xlu0.b32.start [1/8] (short) (narrow) %v1798_v16, 8  ;;  %v1311_v37 = vpack.c.bf16 %v1967_v9, %v1962_v8  ;;  %v1845_v38 = vmov 0.0   ;;  %v1846_v39 = vmov 0   ;;  %s83_s0 = sadd.s32 1, %s1802_s0   ;;  %s1802_s0 = sphi %s2077_s0, %s83_s0   ;;  %v1798_v16 = vphi %v69_v16, %v2473_v16   ;;  %v1794_v17 = vphi %v70_v17, %v2472_v17   ;;  %v1790_v18 = vphi %v71_v18, %v2471_v18   ;;  %v1786_v19 = vphi %v72_v19, %v2470_v19   ;;  %v1782_v20 = vphi %v73_v20, %v2469_v20   ;;  %v1778_v21 = vphi %v74_v21, %v2468_v21   ;;  %v1774_v22 = vphi %v75_v22, %v2467_v22   ;;  %v1770_v23 = vphi %v76_v23, %v2466_v23   ;;  %v1766_v24 = vphi %v77_v24, %v2465_v24   ;;  %v1762_v25 = vphi %v78_v25, %v1000_v25   ;;  %v1758_v26 = vphi %v79_v26, %v2464_v26  }
  0x1d   : > { %1181 = vmatprep.mubr.msk.f32.mxu1 %vm98_vm0, %v1798_v16  ;;  %1180 = vmatpush3.msra.mxu1 %v1766_v24  ;;  %1550 = vrcp.f32 %v1762_v25  ;;  %v351_v40 = vstv %s1911_s18  ;;  %v2148_v43 = vstv %s1913_s19  ;;  %v1315_v25 = vpack.c.bf16 %v1977_v11, %v1972_v10  ;;  %p82_p6 = scmp.ge.s32.totalorder %s83_s0, %s2443_s7 }
  0x1e   : > { %1182 = vmatmul.mubr.msk.f32.vlgmr.msra.gmra.mrb[0].mxu1 %vm98_vm0, %v1794_v17  ;;  %1195 = vmatprep.mubr.msk.f32.mxu0 %vm98_vm0, %v1798_v16  ;;  %v1319_v32 = vpack.c.bf16 %v1987_v13, %v1982_v12  ;;  %vm276_vm1 = vcmask 523264   ;;  %vm1848_vm2 = vmmov 0  }
  0x1f   : > { %1184 = vmatprep.mubr.msk.f32.mxu1 %vm98_vm0, %v1790_v18  ;;  %1312 = vmatprep.subr.bf16.mxu1 %v1311_v37 }
  0x20   : > { %245 = vxpose.xlu0.b32.cont [2/8] (short) (narrow) %v1794_v17, 8  ;;  %1548 = vset.pattern.permute.xlu1 %v1846_v39 }
  0x22   : > { %1185 = vmatmul.mubr.msk.f32.gmra.mrb[2].mxu1 %vm98_vm0, %v1786_v19 }
  0x23   : > { %1187 = vmatprep.mubr.msk.f32.mxu1 %vm98_vm0, %v1782_v20 }
  0x24   : > { %246 = vxpose.xlu0.b32.cont [3/8] (short) (narrow) %v1790_v18, 8 }
  0x26   : > { %1188 = vmatmul.mubr.msk.f32.gmra.mrb[4].mxu1 %vm98_vm0, %v1778_v21 }
  0x27   : > { %1190 = vmatprep.mubr.msk.f32.mxu1 %vm98_vm0, %v1774_v22  ;;  %v1551_v41 = vpop.eup %1550 }
  0x28   : > { %247 = vxpose.xlu0.b32.cont [4/8] (short) (narrow) %v1786_v19, 8  ;;  %v353_v42 = vmul.f32 %v1551_v41, %v351_v40 }
  0x2a   : > { %1191 = vmatmul.mubr.msk.f32.gmra.mrb[6].mxu1 %vm98_vm0, %v1770_v23  ;;  %356 = vperm.xlu1 %1548, %v353_v42  }
  0x2b   : > { %344 = vmatprep.mubr.f32.mxu1 %v1845_v38 }
  0x2c   : > { %248 = vxpose.xlu0.b32.cont [5/8] (short) (narrow) %v1782_v20, 8 }
  0x30   : > { %249 = vxpose.xlu0.b32.cont [6/8] (short) (narrow) %v1778_v21, 8 }
  0x34   : > { %250 = vxpose.xlu0.b32.cont [7/8] (short) (narrow) %v1774_v22, 8 }
  0x38   : > { %251 = vxpose.xlu0.b32.end [8/8] (short) (narrow) %v1770_v23, 8 }
  0x61   : > { %1549 = vset.pattern.permute.xlu0 %v1846_v39  ;;  %v1323_v39 = vpack.c.bf16 %v1997_v15, %v1992_v14 }
  0xf1   : > { %v1183_v44 = vpop.f32.mrb[0].mxu1 }
  0xf2   : > { %v195_v45 = vadd.f32 %v1183_v44, %v2148_v43  ;;  %v189_v46 = vpop.f32.mrb[1].mxu1 }
  0xf3   : > { %v190_v47 = vadd.f32 %v189_v46, %v2148_v43 }
  0xf4   : > { %1552 = vrcp.f32 %v195_v45 }
  0xf5   : > { %1554 = vrcp.f32 %v190_v47  ;;  %v1186_v48 = vpop.f32.mrb[2].mxu1 }
  0xf6   : > { %v205_v49 = vadd.f32 %v1186_v48, %v2148_v43  ;;  %v199_v50 = vpop.f32.mrb[3].mxu1  ;;  %v260_v48 = vpop.trf.xlu0 }
  0xf7   : > { %v200_v51 = vadd.f32 %v199_v50, %v2148_v43 }
  0xf8   : > { %1556 = vrcp.f32 %v205_v49  ;;  %v357_v49 = vpop.permute.xlu1 %356 }
  0xf9   : > { %1558 = vrcp.f32 %v200_v51  ;;  %v1189_v52 = vpop.f32.mrb[4].mxu1 }
  0xfa   : > { %v215_v53 = vadd.f32 %v1189_v52, %v2148_v43  ;;  %v209_v54 = vpop.f32.mrb[5].mxu1 }
  0xfb   : > { %v210_v55 = vadd.f32 %v209_v54, %v2148_v43 }
  0xfc   : > { %1560 = vrcp.f32 %v215_v53 }
  0xfd   : > { %1562 = vrcp.f32 %v210_v55  ;;  %v1192_v56 = vpop.f32.mrb[6].mxu1 }
  0xfe   : > { %v1553_v57 = vpop.eup %1552  ;;  %v225_v58 = vadd.f32 %v1192_v56, %v2148_v43  ;;  %v219_v59 = vpop.f32.mrb[7].mxu1 }
  0xff   : > { %v1555_v60 = vpop.eup %1554  ;;  %v237_v61 = vmul.f32 %v1553_v57, %v1923_v1  ;;  %v220_v62 = vadd.f32 %v219_v59, %v2148_v43 }
 0x100   : > { %v236_v63 = vmul.f32 %v1555_v60, %v1918_v0  ;;  %1564 = vrcp.f32 %v225_v58 }
 0x101   : > { %1566 = vrcp.f32 %v220_v62 }
 0x102   : > { %v1557_v27 = vpop.eup %1556  ;;  %v1313_v28 = vpack.c.bf16 %v237_v61, %v236_v63 }
 0x103   : > { %v1559_v29 = vpop.eup %1558  ;;  %v239_v30 = vmul.f32 %v1557_v27, %v1937_v3 }
 0x104   : > { %v238_v31 = vmul.f32 %v1559_v29, %v1932_v2  ;;  %1314 = vmatpush1.bf16.msra.mxu1 %v1313_v28 }
 0x105   : > { %1316 = vmatprep.subr.bf16.mxu1 %v1315_v25 }
 0x106   : > { %v1561_v33 = vpop.eup %1560  ;;  %v1317_v34 = vpack.c.bf16 %v239_v30, %v238_v31 }
 0x107   : > { %v1563_v35 = vpop.eup %1562  ;;  %v241_v36 = vmul.f32 %v1561_v33, %v1947_v5 }
 0x108   : > { %v240_v37 = vmul.f32 %v1563_v35, %v1942_v4  ;;  %1318 = vmatpush1.bf16.msra.mxu1 %v1317_v34 }
 0x109   : > { %1320 = vmatprep.subr.bf16.mxu1 %v1319_v32 }
 0x10a   : > { %v1565_v41 = vpop.eup %1564  ;;  %v1321_v42 = vpack.c.bf16 %v241_v36, %v240_v37 }
 0x10b   : > { %v1567_v44 = vpop.eup %1566  ;;  %v243_v45 = vmul.f32 %v1565_v41, %v1957_v7 }
 0x10c   : > { %v242_v46 = vmul.f32 %v1567_v44, %v1952_v6  ;;  %1322 = vmatpush1.bf16.msra.mxu1 %v1321_v42 }
 0x10d   : > { %1324 = vmatprep.subr.bf16.mxu1 %v1323_v39 }
 0x10e   : > { %v1325_v47 = vpack.c.bf16 %v243_v45, %v242_v46  ;;  %v1849_v45 = vmov 1.0|1.0  }
 0x110   : > { %1326 = vmatpush1.bf16.msra.mxu1 %v1325_v47 }
 0x113   : > { %1096 = vmatmul.mubr.msk.f32.vlgmr.msra.gmra.mrb[8].mxu1 %vm276_vm1, %v260_v48 }
 0x1e6   : > { %v346_v50 = vpop.f32.mrb[8].mxu1 }
 0x1e7   : > { %v348_v51 = vpop.f32.mrb[9].mxu1 }
 0x1e8   : > { %v359_v52 = vadd.f32 %v357_v49, %v348_v51 }
 0x1ea   : > { %v360_v53 = vadd.f32 %v359_v52, %v2148_v43 }
 0x1ec   : > { %1568 = vrcp.f32 %v360_v53 }
 0x1f6   : > { %v1569_v54 = vpop.eup %1568 }
 0x1f7   : > { %v362_v55 = vmul.f32 %v1569_v54, %v346_v50 }
 0x1f9   : > { %v2175_v24 = vmul.f32 %v1766_v24, %v362_v55   ;;  %v1850_v55 = vmov 1.0  }
 0x1fb   : > { %v2457_v56 = vmov %v2175_v24  ;;  %v1847_v24 = vmov 0.0|0.0  }
 0x1fc   : > { %1193 = vmatprep.subr.mxu0 %v2457_v56  ;;  %1207 = vmatprep.subr.mxu1 %v2457_v56 }
 0x1fd   : > { %1194 = vmatpush3.msra.mxu0 %v2457_v56  ;;  %1208 = vmatpush3.xpose.msra.mxu1 %v2457_v56 }
 0x1fe   : > { %1196 = vmatmul.mubr.msk.f32.vlgmr.msra.gmra.mrb[0].mxu0 %vm98_vm0, %v1794_v17  ;;  %1233 = vmatprep.subr.mxu0 %v1845_v38 }
 0x1ff   : > { %1198 = vmatprep.mubr.msk.f32.mxu0 %vm98_vm0, %v1790_v18  ;;  %1339 = vmatprep.subr.bf16.mxu1 %v1847_v24 }
 0x202   : > { %1199 = vmatmul.mubr.msk.f32.gmra.mrb[2].mxu0 %vm98_vm0, %v1786_v19 }
 0x203   : > { %1201 = vmatprep.mubr.msk.f32.mxu0 %vm98_vm0, %v1782_v20 }
 0x204   : > { %1234 = vmatpush3.xpose.msra.mxu0 %v2457_v56 }
 0x205   : > { %1327 = vmatprep.subr.bf16.mxu0 %v1847_v24 }
 0x206   : > { %1202 = vmatmul.mubr.msk.f32.gmra.mrb[4].mxu0 %vm98_vm0, %v1778_v21 }
 0x207   : > { %1204 = vmatprep.mubr.msk.f32.mxu0 %vm98_vm0, %v1774_v22 }
 0x20a   : > { %1205 = vmatmul.mubr.msk.f32.gmra.mrb[6].mxu0 %vm98_vm0, %v1770_v23 }
 0x20b   : > { %1235 = vmatprep.mubr.msk.f32.mxu0 %vm1848_vm2, %v1845_v38 }
 0x20e   : > { %1236 = vmatmul.mubr.f32.vlgmr.msra.gmra.mrb[8].mxu0 %v1850_v55 }
 0x20f   : > { %1254 = vmatprep.mubr.msk.f32.mxu0 %vm1848_vm2, %v1845_v38 }
 0x2d1   : > { %v1197_v57 = vpop.f32.mrb[0].mxu0 }
 0x2d2   : > { %v436_v58 = vadd.f32 %v1197_v57, %v2148_v43  ;;  %v430_v59 = vpop.f32.mrb[1].mxu0 }
 0x2d3   : > { %v431_v60 = vadd.f32 %v430_v59, %v2148_v43 }
 0x2d4   : > { %1570 = vrcp.f32 %v436_v58  ;;  %v632_v58 = vlaneseq }
 0x2d5   : > { %1572 = vrcp.f32 %v431_v60  ;;  %v1200_v61 = vpop.f32.mrb[2].mxu0 }
 0x2d6   : > { %v446_v62 = vadd.f32 %v1200_v61, %v2148_v43  ;;  %v440_v63 = vpop.f32.mrb[3].mxu0  ;;  %v633_v61 = vshrl.u32 %v632_v58, 7 }
 0x2d7   : > { %v441_v25 = vadd.f32 %v440_v63, %v2148_v43 }
 0x2d8   : > { %1574 = vrcp.f32 %v446_v62 }
 0x2d9   : > { %1576 = vrcp.f32 %v441_v25  ;;  %v1203_v27 = vpop.f32.mrb[4].mxu0 }
 0x2da   : > { %v456_v28 = vadd.f32 %v1203_v27, %v2148_v43  ;;  %v450_v29 = vpop.f32.mrb[5].mxu0  ;;  %v634_v27 = vsub.s32 0, %v633_v61 }
 0x2db   : > { %v451_v30 = vadd.f32 %v450_v29, %v2148_v43 }
 0x2dc   : > { %1578 = vrcp.f32 %v456_v28 }
 0x2dd   : > { %1580 = vrcp.f32 %v451_v30  ;;  %v1206_v31 = vpop.f32.mrb[6].mxu0 }
 0x2de   : > { %v1571_v32 = vpop.eup %1570  ;;  %v466_v33 = vadd.f32 %v1206_v31, %v2148_v43  ;;  %v460_v34 = vpop.f32.mrb[7].mxu0 }
 0x2df   : > { %v1573_v35 = vpop.eup %1572  ;;  %v461_v36 = vadd.f32 %v460_v34, %v2148_v43  ;;  %v478_v39 = vmul.f32 %v1571_v32, %v1923_v1 }
 0x2e0   : > { %v477_v37 = vmul.f32 %v1573_v35, %v1918_v0  ;;  %1582 = vrcp.f32 %v466_v33 }
 0x2e1   : > { %1584 = vrcp.f32 %v461_v36 }
 0x2e2   : > { %v1575_v41 = vpop.eup %1574  ;;  %1209 = vmatprep.mubr.f32.mxu1 %v477_v37  ;;  %1586 = vrcp.f32 %v1758_v26 }
 0x2e3   : > { %v1577_v42 = vpop.eup %1576  ;;  %1210 = vmatmul.mubr.f32.vlgmr.msra.gmra.mrb[10].mxu1 %v478_v39  ;;  %v480_v46 = vmul.f32 %v1575_v41, %v1937_v3 }
 0x2e4   : > { %v479_v44 = vmul.f32 %v1577_v42, %v1932_v2  ;;  %1340 = vmatpush3.bf16.msra.mxu1 %v1849_v45 }
 0x2e5   : > { %1341 = vmatprep.subr.bf16.mxu1 %v1847_v24 }
 0x2e6   : > { %v1579_v47 = vpop.eup %1578  ;;  %1212 = vmatprep.mubr.f32.mxu1 %v479_v44 }
 0x2e7   : > { %v1581_v48 = vpop.eup %1580  ;;  %1213 = vmatmul.mubr.f32.gmra.mrb[12].mxu1 %v480_v46  ;;  %v482_v50 = vmul.f32 %v1579_v47, %v1947_v5 }
 0x2e8   : > { %v481_v49 = vmul.f32 %v1581_v48, %v1942_v4  ;;  %1342 = vmatpush3.bf16.msra.mxu1 %v1849_v45 }
 0x2e9   : > { %1343 = vmatprep.subr.bf16.mxu1 %v1847_v24 }
 0x2ea   : > { %v1583_v51 = vpop.eup %1582  ;;  %1215 = vmatprep.mubr.f32.mxu1 %v481_v49 }
 0x2eb   : > { %v1585_v52 = vpop.eup %1584  ;;  %1216 = vmatmul.mubr.f32.gmra.mrb[14].mxu1 %v482_v50  ;;  %v484_v54 = vmul.f32 %v1583_v51, %v1957_v7 }
 0x2ec   : > { %v483_v53 = vmul.f32 %v1585_v52, %v1952_v6  ;;  %1344 = vmatpush3.bf16.msra.mxu1 %v1849_v45  ;;  %v1587_v63 = vpop.eup %1586 }
 0x2ed   : > { %1345 = vmatprep.subr.bf16.mxu1 %v1847_v24  ;;  %v631_v28 = vmul.f32 %v1587_v63, %v351_v40 }
 0x2ee   : > { %1218 = vmatprep.mubr.f32.mxu1 %v483_v53 }
 0x2ef   : > { %1219 = vmatmul.mubr.f32.gmra.mrb[16].mxu1 %v484_v54  ;;  %v635_v31 = vrot.slane %v631_v28, %v634_v27 }
 0x2f0   : > { %1346 = vmatpush3.bf16.msra.mxu1 %v1849_v45  ;;  %1221 = vmatprep.mubr.f32.mxu1 %v1962_v8 }
 0x2f1   : > { %1347 = vmatprep.subr.bf16.mxu1 %v1847_v24 }
 0x2f3   : > { %1222 = vmatmul.mubr.f32.gmra.mrb[18].mxu1 %v1967_v9 }
 0x2f4   : > { %1348 = vmatpush3.bf16.msra.mxu1 %v1849_v45  ;;  %1224 = vmatprep.mubr.f32.mxu1 %v1972_v10 }
 0x2f5   : > { %1349 = vmatprep.subr.bf16.mxu1 %v1847_v24 }
 0x2f7   : > { %1225 = vmatmul.mubr.f32.gmra.mrb[20].mxu1 %v1977_v11 }
 0x2f8   : > { %1350 = vmatpush3.bf16.msra.mxu1 %v1849_v45  ;;  %1227 = vmatprep.mubr.f32.mxu1 %v1982_v12 }
 0x2f9   : > { %1351 = vmatprep.subr.bf16.mxu1 %v1847_v24 }
 0x2fb   : > { %1228 = vmatmul.mubr.f32.gmra.mrb[22].mxu1 %v1987_v13 }
 0x2fc   : > { %1352 = vmatpush3.bf16.msra.mxu1 %v1849_v45  ;;  %1230 = vmatprep.mubr.f32.mxu1 %v1992_v14 }
 0x2fd   : > { %1353 = vmatprep.subr.bf16.mxu1 %v1847_v24 }
 0x2ff   : > { %1231 = vmatmul.mubr.f32.gmra.mrb[24].mxu1 %v1997_v15 }
 0x300   : > { %1354 = vmatpush3.bf16.msra.mxu1 %v1849_v45  ;;  %1289 = vmatprep.mubr.msk.f32.mxu1 %vm1848_vm2, %v1845_v38 }
 0x303   : > { %1290 = vmatmul.mubr.f32.vlgmr.msra.gmra.mrb[26].mxu1 %v2457_v56 }
 0x3b6   : > { %v1211_v57 = vpop.f32.mrb[10].mxu1 }
 0x3b7   : > { %v551_v59 = vpop.f32.mrb[11].mxu1 }
 0x3ba   : > { %v1214_v60 = vpop.f32.mrb[12].mxu1 }
 0x3bb   : > { %v561_v62 = vpop.f32.mrb[13].mxu1 }
 0x3be   : > { %v1217_v25 = vpop.f32.mrb[14].mxu1 }
 0x3bf   : > { %v571_v29 = vpop.f32.mrb[15].mxu1 }
 0x3c2   : > { %v2249_v30 = vpop.f32.mrb[16].mxu1 }
 0x3c3   : > { %v2251_v32 = vpop.f32.mrb[17].mxu1 }
 0x3c6   : > { %v1223_v33 = vpop.f32.mrb[18].mxu1 }
 0x3c7   : > { %v637_v34 = vadd.f32 %v1223_v33, %v635_v31  ;;  %v591_v26 = vpop.f32.mrb[19].mxu1 }
 0x3c8   : > { %v636_v35 = vadd.f32 %v635_v31, %v591_v26 }
 0x3c9   : > { %v645_v36 = vadd.f32 %v637_v34, %v2148_v43 }
 0x3ca   : > { %v644_v37 = vadd.f32 %v636_v35, %v2148_v43  ;;  %v1226_v39 = vpop.f32.mrb[20].mxu1 }
 0x3cb   : > { %1588 = vrcp.f32 %v645_v36  ;;  %v639_v41 = vadd.f32 %v1226_v39, %v635_v31  ;;  %v601_v42 = vpop.f32.mrb[21].mxu1 }
 0x3cc   : > { %1590 = vrcp.f32 %v644_v37  ;;  %v638_v40 = vadd.f32 %v635_v31, %v601_v42 }
 0x3cd   : > { %v647_v44 = vadd.f32 %v639_v41, %v2148_v43 }
 0x3ce   : > { %v646_v46 = vadd.f32 %v638_v40, %v2148_v43  ;;  %v1229_v47 = vpop.f32.mrb[22].mxu1 }
 0x3cf   : > { %1592 = vrcp.f32 %v647_v44  ;;  %v641_v48 = vadd.f32 %v1229_v47, %v635_v31  ;;  %v611_v49 = vpop.f32.mrb[23].mxu1 }
 0x3d0   : > { %1594 = vrcp.f32 %v646_v46  ;;  %v640_v50 = vadd.f32 %v635_v31, %v611_v49 }
 0x3d1   : > { %v649_v51 = vadd.f32 %v641_v48, %v2148_v43 }
 0x3d2   : > { %v648_v52 = vadd.f32 %v640_v50, %v2148_v43  ;;  %v1232_v53 = vpop.f32.mrb[24].mxu1 }
 0x3d3   : > { %1596 = vrcp.f32 %v649_v51  ;;  %v643_v54 = vadd.f32 %v1232_v53, %v635_v31  ;;  %v621_v58 = vpop.f32.mrb[25].mxu1 }
 0x3d4   : > { %1598 = vrcp.f32 %v648_v52  ;;  %v642_v61 = vadd.f32 %v635_v31, %v621_v58 }
 0x3d5   : > { %v1589_v63 = vpop.eup %1588  ;;  %v651_v27 = vadd.f32 %v643_v54, %v2148_v43 }
 0x3d6   : > { %v1591_v28 = vpop.eup %1590  ;;  %v650_v33 = vadd.f32 %v642_v61, %v2148_v43  ;;  %v2261_v34 = vpop.f32.mrb[26].mxu1  ;;  %v655_v26 = vmul.f32 %v1589_v63, %v1211_v57 }
 0x3d7   : > { %1600 = vrcp.f32 %v651_v27  ;;  %v1291_v35 = vpop.f32.mrb[27].mxu1  ;;  %v653_v36 = vmul.f32 %v1591_v28, %v551_v59  ;;  %v2475_v28 = vmov (%p82_p6), %v2457_v56 }
 0x3d8   : > { %1602 = vrcp.f32 %v650_v33  ;;  %v2264_v17 = vmul.f32 %v1794_v17, %v655_v26  }
 0x3d9   : > { %v1593_v39 = vpop.eup %1592  ;;  %v2267_v16 = vmul.f32 %v1798_v16, %v653_v36  }
 0x3da   : > { %v2458_v37 = vmov %v2264_v17  ;;  %v1595_v31 = vpop.eup %1594  ;;  %v659_v42 = vmul.f32 %v1593_v39, %v1214_v60 }
 0x3db   : > { %v2459_v41 = vmov %v2267_v16  ;;  %v657_v40 = vmul.f32 %v1595_v31, %v561_v62  ;;  %v2482_v35 = vmov (%p82_p6), %v2458_v37 }
 0x3dc   : > { %894 = vxpose.xlu1.b32.start [1/8] (short) (narrow) %v2459_v41, 8  ;;  %v1328_v43 = vpack.c.bf16 %v2458_v37, %v2459_v41  ;;  %v2273_v19 = vmul.f32 %v1786_v19, %v659_v42   ;;  %v2483_v36 = vmov (%p82_p6), %v2459_v41 }
 0x3dd   : > { %v1597_v59 = vpop.eup %1596  ;;  %v2276_v18 = vmul.f32 %v1790_v18, %v657_v40  }
 0x3de   : > { %v2460_v57 = vmov %v2273_v19  ;;  %1329 = vmatpush3.bf16.msra.mxu0 %v1328_v43  ;;  %v1599_v17 = vpop.eup %1598  ;;  %v663_v16 = vmul.f32 %v1597_v59, %v1217_v25 }
 0x3df   : > { %v2461_v44 = vmov %v2276_v18  ;;  %1330 = vmatprep.subr.bf16.mxu0 %v1847_v24  ;;  %v661_v46 = vmul.f32 %v1599_v17, %v571_v29  ;;  %v2472_v17 = vmov %v2458_v37  ;;  %v2480_v33 = vmov (%p82_p6), %v2460_v57 }
 0x3e0   : > { %895 = vxpose.xlu1.b32.cont [2/8] (short) (narrow) %v2458_v37, 8  ;;  %v1331_v60 = vpack.c.bf16 %v2460_v57, %v2461_v44  ;;  %v2283_v21 = vmul.f32 %v1778_v21, %v663_v16   ;;  %v2473_v16 = vmov %v2459_v41 }
 0x3e1   : > { %v1601_v47 = vpop.eup %1600  ;;  %v2286_v20 = vmul.f32 %v1782_v20, %v661_v46  }
 0x3e2   : > { %v2462_v62 = vmov %v2283_v21  ;;  %1332 = vmatpush3.bf16.msra.mxu0 %v1331_v60  ;;  %v1603_v19 = vpop.eup %1602  ;;  %v667_v18 = vmul.f32 %v1601_v47, %v2249_v30  ;;  %v742_v21 = vpop.f32.mrb[8].mxu0  ;;  %v819_v30 = vstv %s1925_s23 }
 0x3e3   : > { %v2463_v48 = vmov %v2286_v20  ;;  %1333 = vmatprep.subr.bf16.mxu0 %v1847_v24  ;;  %v665_v29 = vmul.f32 %v1603_v19, %v2251_v32  ;;  %v2470_v19 = vmov %v2460_v57  ;;  %v2478_v31 = vmov (%p82_p6), %v2462_v62 }
 0x3e4   : > { %896 = vxpose.xlu1.b32.cont [3/8] (short) (narrow) %v2461_v44, 8  ;;  %v1334_v25 = vpack.c.bf16 %v2462_v62, %v2463_v48  ;;  %v675_v49 = vmul.f32 %v1770_v23, %v667_v18   ;;  %v2471_v18 = vmov %v2461_v44 }
 0x3e5   : > { %v674_v50 = vmul.f32 %v1774_v22, %v665_v29   ;;  %v1237_v22 = vpop.f32.mrb[9].mxu0 }
 0x3e6   : > { %1335 = vmatpush3.bf16.msra.mxu0 %v1334_v25  ;;  %v2476_v29 = vmov (%p82_p6), %v675_v49 }
 0x3e7   : > { %1336 = vmatprep.subr.bf16.mxu0 %v1847_v24  ;;  %v1337_v20 = vpack.c.bf16 %v675_v49, %v674_v50  ;;  %v2467_v22 = vmov %v674_v50 }
 0x3e8   : > { %897 = vxpose.xlu1.b32.cont [4/8] (short) (narrow) %v2460_v57, 8 }
 0x3ea   : > { %1338 = vmatpush3.bf16.msra.mxu0 %v1337_v20  ;;  %v2469_v20 = vmov %v2463_v48 }
 0x3eb   : > { %1355 = vmatprep.subr.bf16.mxu0 %v1847_v24 }
 0x3ec   : > { %898 = vxpose.xlu1.b32.cont [5/8] (short) (narrow) %v2463_v48, 8 }
 0x3ed   : > { %1255 = vmatmul.mubr.msk.f32.vlgmr.msra.gmra.mrb[10].mxu0 %vm276_vm1, %v1850_v55 }
 0x3ee   : > { %1356 = vmatpush3.bf16.msra.mxu0 %v1849_v45  ;;  %1308 = vmatprep.mubr.msk.f32.mxu0 %vm1848_vm2, %v1845_v38  ;;  %v821_v38 = vstv %s1927_s24 }
 0x3ef   : > { %1357 = vmatprep.subr.bf16.mxu0 %v1847_v24  ;;  %1604 = vrcp.f32 %v821_v38 }
 0x3f0   : > { %899 = vxpose.xlu1.b32.cont [6/8] (short) (narrow) %v2462_v62, 8 }
 0x3f2   : > { %1358 = vmatpush3.bf16.msra.mxu0 %v1849_v45 }
 0x3f3   : > { %1359 = vmatprep.subr.bf16.mxu0 %v1847_v24 }
 0x3f4   : > { %900 = vxpose.xlu1.b32.cont [7/8] (short) (narrow) %v674_v50, 8 }
 0x3f6   : > { %1360 = vmatpush3.bf16.msra.mxu0 %v1849_v45 }
 0x3f7   : > { %1361 = vmatprep.subr.bf16.mxu0 %v1847_v24 }
 0x3f8   : > { %901 = vxpose.xlu1.b32.end [8/8] (short) (narrow) %v675_v49, 8 }
 0x3f9   : > { %v1605_v52 = vpop.eup %1604 }
 0x3fa   : > { %1362 = vmatpush3.bf16.msra.mxu0 %v1849_v45 }
 0x45c   : > { %v910_v23 = vpop.trf.xlu1 }
 0x45d   : > { %1309 = vmatmul.mubr.msk.f32.vlgmr.msra.gmra.mrb[12].mxu0 %vm276_vm1, %v910_v23  ;;  %v2466_v23 = vmov %v675_v49 }
 0x4c0   : > { %v815_v55 = vpop.f32.mrb[10].mxu0 }
 0x4c1   : > { %v816_v32 = vadd.f32 %v815_v55, %v742_v21  ;;  %v1256_v51 = vpop.f32.mrb[11].mxu0  ;;  %v2468_v21 = vmov %v2462_v62 }
 0x4c3   : > { %v820_v53 = vadd.f32 %v819_v30, %v816_v32  ;;  %v2479_v32 = vmov (%p82_p6), %v2463_v48 }
 0x4c5   : > { %v823_v54 = vmul.f32 %v1605_v52, %v820_v53  }
 0x4c7   : > { %v2464_v26 = vmov %v823_v54  ;;  %v2474_v27 = vmov (%p82_p6), %v823_v54 }
 0x52f   :  { %85 = sbr.rel (!%p82_p6) target bundleno = 28 (0x1c), region = 79 }
 0x530   : > { %v995_v58 = vpop.f32.mrb[12].mxu0 }
 0x531   : > { %v996_v24 = vadd.f32 %v995_v58, %v2261_v34  ;;  %v1310_v61 = vpop.f32.mrb[13].mxu0  ;;  %v2481_v34 = vmov (%p82_p6), %v2461_v44 }
 0x533   : > { %v999_v63 = vadd.f32 %v996_v24, %v819_v30  ;;  %v2465_v24 = vmov %v2457_v56  ;;  %v2477_v30 = vmov (%p82_p6), %v674_v50 }
 0x535   : > { %v1000_v25 = vmul.f32 %v1605_v52, %v999_v63  }
 0x536 PF:  { %1001 = vst [vmem:[#allocation6] sm:$0xff] %v1810_v28  ;;  %vm1011_vm3 = vcmask 57344   ;;  %vm1002_vm4 = vcmask 64512   ;;  %s1851_s11 = smov [#allocation6]   ;;  %s1852_s13 = smov [#allocation7]   ;;  %v1842_v36 = vphi %v2456_v36, %v2483_v36   ;;  %v1838_v35 = vphi %v2455_v35, %v2482_v35   ;;  %v1834_v34 = vphi %v2454_v34, %v2481_v34   ;;  %v1830_v33 = vphi %v2453_v33, %v2480_v33   ;;  %v1826_v32 = vphi %v2452_v32, %v2479_v32   ;;  %v1822_v31 = vphi %v2451_v31, %v2478_v31   ;;  %v1818_v30 = vphi %v2450_v30, %v2477_v30   ;;  %v1814_v29 = vphi %v2449_v29, %v2476_v29   ;;  %v1810_v28 = vphi %v2448_v28, %v2475_v28   ;;  %v1806_v27 = vphi %v2447_v27, %v2474_v27  }
 0x537   :  { %1012 = vst.msk [vmem:[#allocation7] sm:$0x1] %vm1011_vm3, %v1806_v27  ;;  %s1019_s12 = sshll.u32 %s1851_s11, 4  ;;  %s1031_s14 = sshll.u32 %s1852_s13, 4  ;;  %s1020_s12 = int_to_ptr.vmem [resolvable:$true] %s1019_s12  ;;  %s1032_s14 = int_to_ptr.vmem [resolvable:$true] %s1031_s14 }
 0x538   :  { %1003 = vst.msk [vmem:[%s2445_s9] sm:$0xff] %vm1002_vm4, %v1842_v36  ;;  %1004 = vst.msk [vmem:[%s2445_s9 + $0x8] sm:$0xff] %vm1002_vm4, %v1838_v35  ;;  %s1618_s15 = scalar_lea.vmem %s1020_s12, 128  ;;  %p1623_p8 = scmp.lt.s32.totalorder %s1020_s12, %s1020_s12 }
 0x539   :  { %1005 = vst.msk [vmem:[%s2445_s9 + $0x10] sm:$0xff] %vm1002_vm4, %v1834_v34  ;;  %1006 = vst.msk [vmem:[%s2445_s9 + $0x18] sm:$0xff] %vm1002_vm4, %v1830_v33  ;;  %p1619_p7 = scmp.ne.s32.totalorder %s1020_s12, %s1618_s15  ;;  %p1624_p9 = scmp.lt.s32.totalorder %s1618_s15, %s1618_s15 }
 0x53a   :  { %1007 = vst.msk [vmem:[%s2445_s9 + $0x20] sm:$0xff] %vm1002_vm4, %v1826_v32  ;;  %1008 = vst.msk [vmem:[%s2445_s9 + $0x28] sm:$0xff] %vm1002_vm4, %v1822_v31 }
 0x53b   :  { %1009 = vst.msk [vmem:[%s2445_s9 + $0x30] sm:$0xff] %vm1002_vm4, %v1818_v30  ;;  %1010 = vst.msk [vmem:[%s2445_s9 + $0x38] sm:$0xff] %vm1002_vm4, %v1814_v29  ;;  %p1625_p10 = por %p1624_p9, %p1623_p8 }
 0x53d   :  { %p1626_p11 = pnand %p1625_p10, %p1619_p7 }
 0x53f   :  { %1629 = shalt.err (!%p1626_p11)
}
 0x540   :  { %s1630_s20 = scalar_lea.hbm %s2444_s8, 128 }
 0x541   :  { %p1631_p12 = scmp.ne.s32.totalorder %s2444_s8, %s1630_s20  ;;  %p1634_p13 = scmp.lt.u32.totalorder %s1630_s20, %s2444_s8 }
 0x543   :  { %p1636_p0 = pnand %p1634_p13, %p1631_p12 }
 0x545   :  { %1639 = shalt.err (!%p1636_p0)
}
 0x546   :  { %1022 = dma.vmem_to_hbm [thread:$0]  %s1020_s12, 128, %s2444_s8, [#allocation4]  }
 0x547   :  { %s1640_s7 = scalar_lea.vmem %s1032_s14, 16  ;;  %s1644_s18 = scalar_lea.vmem %s1032_s14, 32 }
 0x548   :  { %p1641_p1 = scmp.ne.s32.totalorder %s1032_s14, %s1640_s7  ;;  %p1645_p2 = scmp.lt.s32.totalorder %s1032_s14, %s1032_s14 }
 0x549   :  { %p1646_p3 = scmp.lt.s32.totalorder %s1644_s18, %s1640_s7 }
 0x54b   :  { %p1647_p4 = por %p1646_p3, %p1645_p2 }
 0x54d   :  { %p1648_p5 = pnand %p1647_p4, %p1641_p1 }
 0x54f   :  { %1651 = shalt.err (!%p1648_p5)
}
 0x550   :  { %s1652_s24 = scalar_lea.hbm %s2446_s10, 16 }
 0x551   :  { %p1653_p6 = scmp.ne.s32.totalorder %s2446_s10, %s1652_s24  ;;  %p1656_p7 = scmp.lt.u32.totalorder %s1652_s24, %s2446_s10 }
 0x553   :  { %p1658_p8 = pnand %p1656_p7, %p1653_p6 }
 0x555   :  { %1661 = shalt.err (!%p1658_p8)
}
 0x556   :  { %1034 = dma.vmem_to_hbm [thread:$0]  %s1032_s14, 16, %s2446_s10, [#allocation8]  }
 0x557   :  { %1752 = dma.done.wait [#allocation4], 128  }
 0x558   :  { %1753 = vsyncadd [#allocation4], 4294967168 }
 0x559   :  { %1754 = dma.done.wait [#allocation8], 16  }
 0x55a   :  { %1755 = vsyncadd [#allocation8], 4294967280 }
 0x55b   :  { %1043 = vsyncpa [#allocation4], 1 }
 0x55c   :  { %1044 = vsyncpa [#allocation8], 1 }
 0x55d   :  { %1045 = vsyncpa [#allocation5], 1 }

</bundles_post_ra>
